<compile_context>
chip_gen: v6e
topology: v6e:2x2x1
jax: 0.10.0
libtpu: 0.0.40
codegen_flags: <defaults>
</compile_context>

<pallas_src>
import jax
import jax.numpy as jnp
from jax.experimental import pallas as pl
from jax.experimental.pallas import tpu as pltpu

_LANE = 128
_BLOCK_BYTES = 4 * 1024 * 1024       # ~4 MiB blocks: measured HBM-roofline sweet spot
_FEATURE_TILE = 2048                 # lanes per block when features must be tiled
_FASTPATH_MAX_ELEMS = 1 << 17        # below this, pallas launch overhead dominates


def _round_up(x: int, m: int) -> int:
    return ((x + m - 1) // m) * m


def _sublane(itemsize: int) -> int:
    # 8 rows per vreg for 4-byte, 16 for 2-byte, 32 for 1-byte dtypes.
    return max(8, 32 // max(1, itemsize))


def _tensorcores_per_chip() -> int:
    """Best-effort TensorCores-per-chip (v7x == 2).  Defaults to 2: forcing the
    batch split costs ~0.35us on 1-TC chips, skipping it on a 2-TC chip would
    idle half the bandwidth."""
    try:
        info = pltpu.get_tpu_info()
        for name in ("num_cores", "core_count", "num_tensorcores",
                     "tensorcores_per_chip", "num_tensor_cores"):
            v = getattr(info, name, None)
            if v:
                return int(v)
    except Exception:
        pass
    return 2


def _choose_tiles(B: int, F: int, itemsize: int):
    sublane = _sublane(itemsize)

    # Feature (lane) axis: prefer full-width rows (one contiguous slab per DMA)
    # as long as a sublane-height, full-width block fits the block budget.
    if F * sublane * itemsize <= _BLOCK_BYTES:
        tile_f = F
    else:
        tile_f = _FEATURE_TILE                       # multiple of 128
    nf = pl.cdiv(F, tile_f)

    # Batch (sublane) axis: ~4 MiB blocks; x + out double-buffered ~= 16 MiB live.
    budget_rows = max(sublane,
                      (_BLOCK_BYTES // (tile_f * itemsize)) // sublane * sublane)
    tile_b = min(budget_rows, _round_up(B, sublane))
    if tile_b > B:
        tile_b = B                                   # full-dim block is always legal

    # Whole problem in one block but enough work -> split the batch so both
    # TensorCores of a megacore (v7x) chip are fed.
    if (nf == 1 and tile_b >= B and B >= 2 * sublane
            and _tensorcores_per_chip() >= 2):
        tile_b = _round_up(pl.cdiv(B, 2), sublane)
    return tile_b, tile_f


def _affine_kernel(x_ref, w0_ref, w1_ref, o_ref):
    # Pure VPU elementwise; weight rows broadcast over the batch (sublane) axis.
    # Compute in f32 (weights are f32 parameters), cast only the output.
    x = x_ref[...].astype(jnp.float32)
    o_ref[...] = (w0_ref[...] + x * w1_ref[...]).astype(o_ref.dtype)


def single_connected_layer(x, w0, w1, *, donate_x: bool = False, use_kernel=None):
    """y = W0 + W1 * x (per feature).

    x: (B, F); w0, w1: (F,) float32 parameters.
    use_kernel: None = auto (XLA fast path below ~128K elements), True/False force.
    donate_x: alias x's HBM buffer to the output (valid: no padding of x).
    """
    B, F = x.shape
    assert w0.shape == (F,) and w1.shape == (F,)
    w0 = w0.astype(jnp.float32)
    w1 = w1.astype(jnp.float32)

    if use_kernel is None:
        use_kernel = B * F >= _FASTPATH_MAX_ELEMS
    if not use_kernel:
        # Tiny shapes: pallas launch + pipeline prologue dominates; XLA fuses this.
        y = w0[None, :] + x.astype(jnp.float32) * w1[None, :]
        return y.astype(x.dtype)

    itemsize = jnp.dtype(x.dtype).itemsize
    tile_b, tile_f = _choose_tiles(B, F, itemsize)
    nb, nf = pl.cdiv(B, tile_b), pl.cdiv(F, tile_f)

    w0_2d = w0.reshape(1, F)
    w1_2d = w1.reshape(1, F)

    if nf == 1:
        # Full-width rows: contiguous slab DMAs; weights resident for the whole run.
        grid = (nb,)
        in_specs = [
            pl.BlockSpec((tile_b, F), lambda i: (i, 0)),
            pl.BlockSpec((1, F), lambda i: (0, 0)),
            pl.BlockSpec((1, F), lambda i: (0, 0)),
        ]
        out_specs = pl.BlockSpec((tile_b, F), lambda i: (i, 0))
        dim_sem = ("parallel",)
    else:
        # Feature axis tiled: make it the slow grid axis so the small weight
        # DMAs are re-issued only once per feature tile (not every step).
        Fw = nf * tile_f
        if Fw != F:                                   # pad only the tiny weight rows
            w0_2d = jnp.pad(w0_2d, ((0, 0), (0, Fw - F)))
            w1_2d = jnp.pad(w1_2d, ((0, 0), (0, Fw - F)))
        grid = (nf, nb)
        in_specs = [
            pl.BlockSpec((tile_b, tile_f), lambda j, i: (i, j)),
            pl.BlockSpec((1, tile_f), lambda j, i: (0, j)),
            pl.BlockSpec((1, tile_f), lambda j, i: (0, j)),
        ]
        out_specs = pl.BlockSpec((tile_b, tile_f), lambda j, i: (i, j))
        dim_sem = ("parallel", "parallel")

    # VMEM limit sized to the real footprint (x + out double-buffered + weights),
    # with 2x margin; stays well under 64 MiB (v7x) and above v5e's 16 MiB default.
    block_bytes = tile_b * tile_f * itemsize
    footprint = 4 * block_bytes + 4 * tile_f * 4
    vmem_limit = int(min(128 * 1024 * 1024, max(2 * footprint, 16 * 1024 * 1024)))

    cost = pl.CostEstimate(
        flops=2 * B * F,
        transcendentals=0,
        bytes_accessed=2 * B * F * itemsize + 2 * F * 4,
    )

    return pl.pallas_call(
        _affine_kernel,
        out_shape=jax.ShapeDtypeStruct((B, F), x.dtype),
        grid=grid,
        in_specs=in_specs,
        out_specs=out_specs,
        compiler_params=pltpu.CompilerParams(
            dimension_semantics=dim_sem,
            vmem_limit_bytes=vmem_limit,
        ),
        cost_estimate=cost,
        input_output_aliases=({0: 0} if donate_x else {}),
    )(x, w0_2d, w1_2d)


if __name__ == "__main__":
    key = jax.random.PRNGKey(0)

    # --- Module-spec shapes (B=2, F=32) with the module's deterministic init:
    #     W0 = zeros(F), W1 = full(F, 0.01).  Auto path -> tiny-input fast path.
    B, F = 2, 32
    x = jax.random.normal(key, (B, F), dtype=jnp.float32)
    w0 = jnp.zeros((F,), jnp.float32)
    w1 = jnp.full((F,), 0.01, jnp.float32)
    y_ref = w0[None, :] + x * w1[None, :]

    y = jax.block_until_ready(single_connected_layer(x, w0, w1))
    assert y.shape == (B, F)
    assert jnp.allclose(y, y_ref, atol=1e-6, rtol=1e-6)

    # Same tiny shape forced through the Pallas kernel (full-dim blocks).
    y_k = jax.block_until_ready(single_connected_layer(x, w0, w1, use_kernel=True))
    assert jnp.allclose(y_k, y_ref, atol=1e-6, rtol=1e-6)

    # --- Larger, lane-unaligned shape (F=3000): full-width contiguous blocks,
    #     ragged batch edge handled in the grid (no pad / slice HBM round trips).
    B2, F2 = 2048, 3000
    k1, k2, k3 = jax.random.split(key, 3)
    x2 = jax.random.normal(k1, (B2, F2), dtype=jnp.float32)
    w0_2 = jax.random.normal(k2, (F2,), dtype=jnp.float32)
    w1_2 = jax.random.normal(k3, (F2,), dtype=jnp.float32)
    y2 = jax.block_until_ready(single_connected_layer(x2, w0_2, w1_2))
    y2_ref = w0_2[None, :] + x2 * w1_2[None, :]
    assert y2.shape == (B2, F2)
    assert jnp.allclose(y2, y2_ref, atol=1e-5, rtol=1e-5)

    # --- bf16 activations: f32 compute inside the kernel, bf16 store,
    #     dtype-aware (16-row) sublane alignment + forced 2-tile batch split.
    B3, F3 = 64, 3000
    x3 = jax.random.normal(k1, (B3, F3), dtype=jnp.bfloat16)
    y3 = jax.block_until_ready(single_connected_layer(x3, w0_2, w1_2))
    y3_ref = (w0_2[None, :] + x3.astype(jnp.float32) * w1_2[None, :]).astype(jnp.bfloat16)
    assert y3.shape == (B3, F3)
    assert jnp.allclose(y3.astype(jnp.float32), y3_ref.astype(jnp.float32),
                        atol=1e-2, rtol=1e-2)

    print("KERNEL_OK")
</pallas_src>

<mosaic_0001>
module attributes {stable_mosaic.version = 11 : i64} {
  func.func @_affine_kernel(%arg0: i32, %arg1: memref<2x32xf32, #tpu.memory_space<vmem>>, %arg2: memref<1x32xf32, #tpu.memory_space<vmem>>, %arg3: memref<1x32xf32, #tpu.memory_space<vmem>>, %arg4: memref<2x32xf32, #tpu.memory_space<vmem>>) attributes {dimension_semantics = [#tpu.dimension_semantics<parallel>], iteration_bounds = array<i64: 1>, scalar_prefetch = 0 : i64, scratch_operands = 0 : i64, tpu.core_type = #tpu.core_type<tc>, window_params = [{transform_indices = @transform_0, window_bounds = array<i64: 2, 32>}, {pipeline_mode = #tpu.pipeline_mode<synchronous>, transform_indices = @transform_1, window_bounds = array<i64: 1, 32>}, {pipeline_mode = #tpu.pipeline_mode<synchronous>, transform_indices = @transform_2, window_bounds = array<i64: 1, 32>}, {transform_indices = @transform_3, window_bounds = array<i64: 2, 32>}]} {
    %c0 = arith.constant 0 : index
    %c0_0 = arith.constant 0 : index
    %0 = vector.load %arg1[%c0, %c0_0] : memref<2x32xf32, #tpu.memory_space<vmem>>, vector<2x32xf32>
    %c0_1 = arith.constant 0 : index
    %c0_2 = arith.constant 0 : index
    %1 = vector.load %arg2[%c0_1, %c0_2] : memref<1x32xf32, #tpu.memory_space<vmem>>, vector<1x32xf32>
    %c0_3 = arith.constant 0 : index
    %c0_4 = arith.constant 0 : index
    %2 = vector.load %arg3[%c0_3, %c0_4] : memref<1x32xf32, #tpu.memory_space<vmem>>, vector<1x32xf32>
    %3 = vector.broadcast %2 : vector<1x32xf32> to vector<2x32xf32>
    %4 = arith.mulf %0, %3 : vector<2x32xf32>
    %5 = vector.broadcast %1 : vector<1x32xf32> to vector<2x32xf32>
    %6 = arith.addf %5, %4 : vector<2x32xf32>
    %c0_5 = arith.constant 0 : index
    %c0_6 = arith.constant 0 : index
    %7 = vector.load %arg4[%c0_5, %c0_6] : memref<2x32xf32, #tpu.memory_space<vmem>>, vector<2x32xf32>
    tpu.vector_store %arg4[%c0_5, %c0_6], %6 {strides = array<i32>} : memref<2x32xf32, #tpu.memory_space<vmem>>, vector<2x32xf32>,
    return
  }
  func.func @transform_0(%arg0: i32) -> (i32, i32) {
    %c0_i32 = arith.constant 0 : i32
    %c0_i32_0 = arith.constant 0 : i32
    return %arg0, %c0_i32 : i32, i32
  }
  func.func @transform_1(%arg0: i32) -> (i32, i32) {
    %c0_i32 = arith.constant 0 : i32
    %c0_i32_0 = arith.constant 0 : i32
    %c0_i32_1 = arith.constant 0 : i32
    return %c0_i32, %c0_i32_0 : i32, i32
  }
  func.func @transform_2(%arg0: i32) -> (i32, i32) {
    %c0_i32 = arith.constant 0 : i32
    %c0_i32_0 = arith.constant 0 : i32
    %c0_i32_1 = arith.constant 0 : i32
    return %c0_i32, %c0_i32_0 : i32, i32
  }
  func.func @transform_3(%arg0: i32) -> (i32, i32) {
    %c0_i32 = arith.constant 0 : i32
    %c0_i32_0 = arith.constant 0 : i32
    return %arg0, %c0_i32 : i32, i32
  }
}

</mosaic_0001>

<bundles_post_ra>
// kernel: tpu_custom_call.1
= control target key start
LH: loop header
LB: loop body
LE: loop exit
PB: predicated region body
PF: predicated region fallthrough
CT: control target
= control target key end

     0   :  { %8 = vsyncpa [#allocation3], 0  ;;  %s143_s0 = inlined_call_operand.hbm [shape: f32[2,32], index: 0, kind: input, shape index: {}]   ;;  %s144_s1 = inlined_call_operand.vmem [shape: f32[1,32], index: 1, kind: input, shape index: {}]   ;;  %s145_s2 = inlined_call_operand.vmem [shape: f32[1,32], index: 2, kind: input, shape index: {}]   ;;  %s146_s3 = inlined_call_operand.hbm [shape: f32[2,32], index: 3, kind: output, shape index: {}]  }
   0x1   :  { %9 = vsyncpa [#allocation4], 0  ;;  %s109_s12 = smov [#allocation2]  }
   0x2   :  { %s16_s13 = sshll.u32 %s109_s12, 4  ;;  %s17_s13 = int_to_ptr.vmem [resolvable:$true] %s16_s13 }
   0x3   :  { %s73_s14 = scalar_lea.vmem %s17_s13, 32  ;;  %p78_p1 = scmp.lt.s32.totalorder %s17_s13, %s17_s13 }
   0x4   :  { %p74_p0 = scmp.ne.s32.totalorder %s17_s13, %s73_s14  ;;  %p79_p2 = scmp.lt.s32.totalorder %s73_s14, %s73_s14 }
   0x6   :  { %p80_p3 = por %p79_p2, %p78_p1 }
   0x8   :  { %p81_p4 = pnand %p80_p3, %p74_p0 }
   0xa   :  { %84 = shalt.err (!%p81_p4)
}
   0xb   :  { %19 = dma.hbm_to_vmem [thread:$0]  %s143_s0, 32, %s17_s13, [#allocation3]  }
   0xc   :  { %105 = dma.done.wait [#allocation3], 32  }
   0xd   :  { %106 = vsyncadd [#allocation3], 4294967264  ;;  %s110_s17 = smov [#allocation5]   ;;  %v27_v0 = vld [vmem:[#allocation2] sm:$0x3]  ;;  %vm44_vm0 = vcmask 254976  }
   0xe   :  { %s52_s18 = sshll.u32 %s110_s17, 4  ;;  %v62_v1 = vld [vmem:[%s144_s1] ss:$0 sm:$0xff]  ;;  %s53_s18 = int_to_ptr.vmem [resolvable:$true] %s52_s18 }
   0xf   :  { %v61_v2 = vld [vmem:[%s145_s2] ss:$0 sm:$0xff]  ;;  %s85_s23 = scalar_lea.vmem %s53_s18, 32  ;;  %p90_p6 = scmp.lt.s32.totalorder %s53_s18, %s53_s18 }
  0x10   :  { %v36_v3 = vmul.f32 %v61_v2, %v27_v0  ;;  %p86_p5 = scmp.ne.s32.totalorder %s53_s18, %s85_s23  ;;  %p91_p7 = scmp.lt.s32.totalorder %s85_s23, %s85_s23 }
  0x12   :  { %v43_v4 = vadd.f32 %v62_v1, %v36_v3  ;;  %p92_p8 = por %p91_p7, %p90_p6 }
  0x14   :  { %45 = vst.msk [vmem:[#allocation5] sm:$0x3] %vm44_vm0, %v43_v4  ;;  %p93_p9 = pnand %p92_p8, %p86_p5 }
  0x16   :  { %96 = shalt.err (!%p93_p9)
}
  0x17   :  { %55 = dma.vmem_to_hbm [thread:$0]  %s53_s18, 32, %s146_s3, [#allocation4]  }
  0x18   :  { %107 = dma.done.wait [#allocation4], 32  }
  0x19   :  { %108 = vsyncadd [#allocation4], 4294967264 }
  0x1a   :  { %59 = vsyncpa [#allocation3], 1 }
  0x1b   :  { %60 = vsyncpa [#allocation4], 1 }

</bundles_post_ra>
